<compile_context>
chip_gen: v6e
topology: v6e:2x2x1
jax: 0.10.0
libtpu: 0.0.40
codegen_flags: <defaults>
</compile_context>

<pallas_src>
import jax
import jax.numpy as jnp
from jax.experimental import pallas as pl
from jax.experimental.pallas import tpu as pltpu


def mlp_kernel(x_ref, w1_ref, b1_ref, w2_ref, b2_ref, o_ref):
    # In-kernel bf16 cast of the f32 x tile (VPU filler, hides under the MXU slot).
    x = x_ref[...].astype(jnp.bfloat16)
    # layer1: (TM, D_in) @ (D_in, Hp) on the MXU, f32 accumulation.
    h = jnp.dot(x, w1_ref[...], preferred_element_type=jnp.float32)
    # bias + ReLU epilogue in f32 (v5e has no bf16 VPU path).
    h = jnp.maximum(h + b1_ref[...], 0.0)
    # layer2: cast h back to bf16 for the MXU, accumulate in f32.
    y = jnp.dot(h.astype(w2_ref.dtype), w2_ref[...],
                preferred_element_type=jnp.float32)
    y = y + b2_ref[...]
    o_ref[...] = y.astype(o_ref.dtype)


def _round_up(n, m):
    return ((n + m - 1) // m) * m


def _pad_to(a, shape):
    pads = [(0, t - s) for s, t in zip(a.shape, shape)]
    if any(p[1] for p in pads):
        return jnp.pad(a, pads)
    return a


def _choose_tm(B, max_tm, min_tm=16):
    """Pick the largest batch tile (multiple of 16) whose batch-padding waste is
    <=10% of the padded batch; otherwise the candidate with minimal waste."""
    candidates = [c for c in (1024, 512, 256, 128, 64, 32, 16)
                  if min_tm <= c <= max(max_tm, min_tm)]
    if not candidates:
        candidates = [min_tm]
    best = None  # (sort_key, tm, bp)
    for tm in candidates:  # descending
        bp = _round_up(max(B, tm), tm)
        waste = bp - B
        if waste * 10 <= bp:
            return tm, bp
        key = (waste, -tm)
        if best is None or key < best[0]:
            best = (key, tm, bp)
    return best[1], best[2]


def prepare_params(w1, b1, w2, b2):
    """Pad hidden/output dims to lane-dense multiples of 128 and cast weights to
    bf16 ONCE (hoisted out of the per-forward path). Biases stay f32 (epilogue)."""
    D_in, H = w1.shape
    D_out = w2.shape[1]
    Hp = _round_up(max(H, 128), 128)
    Op = _round_up(max(D_out, 128), 128)
    return {
        "w1": _pad_to(jnp.asarray(w1), (D_in, Hp)).astype(jnp.bfloat16),
        "b1": _pad_to(jnp.asarray(b1).reshape(1, -1), (1, Hp)).astype(jnp.float32),
        "w2": _pad_to(jnp.asarray(w2), (Hp, Op)).astype(jnp.bfloat16),
        "b2": _pad_to(jnp.asarray(b2).reshape(1, -1), (1, Op)).astype(jnp.float32),
        "hidden_dim": int(H),
        "output_dim": int(D_out),
    }


def two_layer_net(x, params, *, max_tm=1024, x_buffers=2, out_dtype=jnp.float32):
    """Forward pass: relu(x @ w1 + b1) @ w2 + b2.

    x: (B, D_in) float array. params: output of prepare_params()."""
    B, D_in = x.shape
    w1_p, b1_p, w2_p, b2_p = params["w1"], params["b1"], params["w2"], params["b2"]
    assert w1_p.shape[0] == D_in, "x feature dim does not match w1"
    Hp = w1_p.shape[1]
    Op = w2_p.shape[1]
    D_out = params["output_dim"]

    # Batch tiling: multiple of 16, minimal padding waste.
    TM, Bp = _choose_tm(B, max_tm)
    n_tiles = Bp // TM
    # Guarantee >=2 batch tiles when possible so the parallel grid axis can be
    # sharded across v7x's two TensorCores (no effect on single-TC v5e/v6e).
    if n_tiles == 1 and TM >= 32:
        TM = _round_up(TM // 2, 16)
        Bp = _round_up(B, TM)
        n_tiles = Bp // TM

    # Batch-pad x only; it stays f32 in HBM (bf16 cast happens in-kernel).
    x_p = _pad_to(x.astype(jnp.float32), (Bp, D_in))

    # Tight VMEM accounting (no blanket x2): multi-buffered x tiles, double-
    # buffered bf16 out tiles, single-buffered resident weights/biases, plus the
    # in-kernel intermediates, plus a small fixed slack.
    MiB = 1024 * 1024
    vmem_bytes = (
        x_buffers * TM * D_in * 4        # x tiles (f32, x_buffers-deep)
        + 2 * TM * Op * 2                # out tiles (bf16, double-buffered)
        + (D_in * Hp + Hp * Op) * 2      # resident weights (bf16, single-buffered)
        + (Hp + Op) * 4                  # resident biases (f32, single-buffered)
        + TM * D_in * 2                  # in-kernel bf16 copy of the x tile
        + TM * Hp * (4 + 2)              # intermediate h (f32) + bf16 recast
        + TM * Op * 4                    # f32 y before the bf16 store
    )
    try:
        phys_vmem = int(pltpu.get_tpu_info().vmem_capacity_bytes)
    except Exception:
        phys_vmem = 64 * MiB  # conservative (v7x per-TC VMEM)
    cap = max(phys_vmem - 16 * MiB, 32 * MiB)   # ~48 MiB on v7x, ~112 MiB on v5e/v6e
    vmem_limit = int(min(max(vmem_bytes + 4 * MiB, 16 * MiB), cap))
    # TODO(synk): if bf16 (D_in*Hp + Hp*Op) ever exceeds ~40% of `cap` (large
    # hidden dims on v7x), switch to a K/N-split grid with a pl.when-initialized
    # accumulator instead of keeping both weight matrices fully resident.

    resident = dict(pipeline_mode=pl.Buffered(1))   # constant index_map -> 1 buffer

    out_p = pl.pallas_call(
        mlp_kernel,
        out_shape=jax.ShapeDtypeStruct((Bp, Op), jnp.bfloat16),
        grid=(n_tiles,),
        in_specs=[
            pl.BlockSpec((TM, D_in), lambda i: (i, 0),
                         pipeline_mode=pl.Buffered(x_buffers)),   # x: batch-tiled
            pl.BlockSpec((D_in, Hp), lambda i: (0, 0), **resident),  # w1
            pl.BlockSpec((1, Hp), lambda i: (0, 0), **resident),     # b1
            pl.BlockSpec((Hp, Op), lambda i: (0, 0), **resident),    # w2
            pl.BlockSpec((1, Op), lambda i: (0, 0), **resident),     # b2
        ],
        out_specs=pl.BlockSpec((TM, Op), lambda i: (i, 0)),
        compiler_params=pltpu.CompilerParams(
            dimension_semantics=("parallel",),
            vmem_limit_bytes=vmem_limit,
        ),
    )(x_p, w1_p, b1_p, w2_p, b2_p)

    # Slice away batch / lane padding; upcast only the small sliced result.
    return out_p[:B, :D_out].astype(out_dtype)


def init_linear_params(key, in_features, out_features):
    """Deterministic init mimicking torch.nn.Linear: U(-1/sqrt(fan_in), 1/sqrt(fan_in)).
    Weight stored pre-transposed as (in_features, out_features)."""
    k_w, k_b = jax.random.split(key)
    bound = 1.0 / jnp.sqrt(jnp.float32(in_features))
    w = jax.random.uniform(k_w, (in_features, out_features), jnp.float32, -bound, bound)
    b = jax.random.uniform(k_b, (1, out_features), jnp.float32, -bound, bound)
    return w, b


if __name__ == "__main__":
    # Small shapes consistent with TwoLayerNet(input_dim, hidden_dim, output_dim).
    # TODO(synk): the auto_LiRPA BoundedTensor / PerturbationLpNorm wrapping is
    # verification-framework setup, not part of the module's forward pass.
    batch, input_dim, hidden_dim, output_dim = 8, 64, 32, 16

    key = jax.random.PRNGKey(0)
    k_x, k_l1, k_l2 = jax.random.split(key, 3)

    x = jax.random.normal(k_x, (batch, input_dim), jnp.float32)
    w1, b1 = init_linear_params(k_l1, input_dim, hidden_dim)
    w2, b2 = init_linear_params(k_l2, hidden_dim, output_dim)

    # Pad / cast the weights once (hoisted out of the per-call path).
    params = prepare_params(w1, b1, w2, b2)

    out = two_layer_net(x, params)
    out = jax.block_until_ready(out)

    # Reference check against plain JAX f32 (same math as the PyTorch forward).
    # Tolerance covers bf16 operands + bf16 output store with f32 accumulation.
    ref = jnp.maximum(x @ w1 + b1, 0.0) @ w2 + b2
    assert out.shape == (batch, output_dim)
    out_f32 = out.astype(jnp.float32)
    assert jnp.allclose(out_f32, ref, atol=3e-2, rtol=3e-2), (
        float(jnp.max(jnp.abs(out_f32 - ref))))

    print("KERNEL_OK")
</pallas_src>

<mosaic_0001>
module attributes {stable_mosaic.version = 11 : i64} {
  func.func @mlp_kernel(%arg0: i32, %arg1: memref<16x64xf32, #tpu.memory_space<vmem>>, %arg2: memref<64x128xbf16, #tpu.memory_space<vmem>>, %arg3: memref<1x128xf32, #tpu.memory_space<vmem>>, %arg4: memref<128x128xbf16, #tpu.memory_space<vmem>>, %arg5: memref<1x128xf32, #tpu.memory_space<vmem>>, %arg6: memref<16x128xbf16, #tpu.memory_space<vmem>>) attributes {dimension_semantics = [#tpu.dimension_semantics<parallel>], iteration_bounds = array<i64: 1>, scalar_prefetch = 0 : i64, scratch_operands = 0 : i64, tpu.core_type = #tpu.core_type<tc>, window_params = [{pipeline_mode = #tpu.pipeline_mode<double_buffered>, transform_indices = @transform_0, window_bounds = array<i64: 16, 64>}, {pipeline_mode = #tpu.pipeline_mode<synchronous>, transform_indices = @transform_1, window_bounds = array<i64: 64, 128>}, {pipeline_mode = #tpu.pipeline_mode<synchronous>, transform_indices = @transform_2, window_bounds = array<i64: 1, 128>}, {pipeline_mode = #tpu.pipeline_mode<synchronous>, transform_indices = @transform_3, window_bounds = array<i64: 128, 128>}, {pipeline_mode = #tpu.pipeline_mode<synchronous>, transform_indices = @transform_4, window_bounds = array<i64: 1, 128>}, {transform_indices = @transform_5, window_bounds = array<i64: 16, 128>}]} {
    %c0 = arith.constant 0 : index
    %c0_0 = arith.constant 0 : index
    %0 = vector.load %arg1[%c0, %c0_0] : memref<16x64xf32, #tpu.memory_space<vmem>>, vector<16x64xf32>
    %1 = arith.truncf %0 : vector<16x64xf32> to vector<16x64xbf16>
    %c0_1 = arith.constant 0 : index
    %c0_2 = arith.constant 0 : index
    %2 = vector.load %arg2[%c0_1, %c0_2] : memref<64x128xbf16, #tpu.memory_space<vmem>>, vector<64x128xbf16>
    %cst = arith.constant dense<0.000000e+00> : vector<16x128xf32>
    %3 = tpu.matmul %1, %2, %cst {dimension_numbers = #tpu.dot_dimension_numbers<[1], [0], [0], [1], [0, 0, 1, 1], [], []>} : vector<16x64xbf16>, vector<64x128xbf16>, vector<16x128xf32> -> vector<16x128xf32>
    %c0_3 = arith.constant 0 : index
    %c0_4 = arith.constant 0 : index
    %4 = vector.load %arg3[%c0_3, %c0_4] : memref<1x128xf32, #tpu.memory_space<vmem>>, vector<1x128xf32>
    %5 = vector.broadcast %4 : vector<1x128xf32> to vector<16x128xf32>
    %6 = arith.addf %3, %5 : vector<16x128xf32>
    %cst_5 = arith.constant 0.000000e+00 : f32
    %7 = vector.broadcast %cst_5 : f32 to vector<16x128xf32>
    %8 = arith.maximumf %6, %7 : vector<16x128xf32>
    %9 = arith.truncf %8 : vector<16x128xf32> to vector<16x128xbf16>
    %c0_6 = arith.constant 0 : index
    %c0_7 = arith.constant 0 : index
    %10 = vector.load %arg4[%c0_6, %c0_7] : memref<128x128xbf16, #tpu.memory_space<vmem>>, vector<128x128xbf16>
    %cst_8 = arith.constant dense<0.000000e+00> : vector<16x128xf32>
    %11 = tpu.matmul %9, %10, %cst_8 {dimension_numbers = #tpu.dot_dimension_numbers<[1], [0], [0], [1], [0, 0, 1, 1], [], []>} : vector<16x128xbf16>, vector<128x128xbf16>, vector<16x128xf32> -> vector<16x128xf32>
    %c0_9 = arith.constant 0 : index
    %c0_10 = arith.constant 0 : index
    %12 = vector.load %arg5[%c0_9, %c0_10] : memref<1x128xf32, #tpu.memory_space<vmem>>, vector<1x128xf32>
    %13 = vector.broadcast %12 : vector<1x128xf32> to vector<16x128xf32>
    %14 = arith.addf %11, %13 : vector<16x128xf32>
    %15 = arith.truncf %14 : vector<16x128xf32> to vector<16x128xbf16>
    %c0_11 = arith.constant 0 : index
    %c0_12 = arith.constant 0 : index
    %16 = vector.load %arg6[%c0_11, %c0_12] : memref<16x128xbf16, #tpu.memory_space<vmem>>, vector<16x128xbf16>
    tpu.vector_store %arg6[%c0_11, %c0_12], %15 {strides = array<i32>} : memref<16x128xbf16, #tpu.memory_space<vmem>>, vector<16x128xbf16>,
    return
  }
  func.func @transform_0(%arg0: i32) -> (i32, i32) {
    %c0_i32 = arith.constant 0 : i32
    %c0_i32_0 = arith.constant 0 : i32
    return %arg0, %c0_i32 : i32, i32
  }
  func.func @transform_1(%arg0: i32) -> (i32, i32) {
    %c0_i32 = arith.constant 0 : i32
    %c0_i32_0 = arith.constant 0 : i32
    %c0_i32_1 = arith.constant 0 : i32
    return %c0_i32, %c0_i32_0 : i32, i32
  }
  func.func @transform_2(%arg0: i32) -> (i32, i32) {
    %c0_i32 = arith.constant 0 : i32
    %c0_i32_0 = arith.constant 0 : i32
    %c0_i32_1 = arith.constant 0 : i32
    return %c0_i32, %c0_i32_0 : i32, i32
  }
  func.func @transform_3(%arg0: i32) -> (i32, i32) {
    %c0_i32 = arith.constant 0 : i32
    %c0_i32_0 = arith.constant 0 : i32
    %c0_i32_1 = arith.constant 0 : i32
    return %c0_i32, %c0_i32_0 : i32, i32
  }
  func.func @transform_4(%arg0: i32) -> (i32, i32) {
    %c0_i32 = arith.constant 0 : i32
    %c0_i32_0 = arith.constant 0 : i32
    %c0_i32_1 = arith.constant 0 : i32
    return %c0_i32, %c0_i32_0 : i32, i32
  }
  func.func @transform_5(%arg0: i32) -> (i32, i32) {
    %c0_i32 = arith.constant 0 : i32
    %c0_i32_0 = arith.constant 0 : i32
    return %arg0, %c0_i32 : i32, i32
  }
}

</mosaic_0001>

<bundles_post_ra>
// kernel: tpu_custom_call.1
= control target key start
LH: loop header
LB: loop body
LE: loop exit
PB: predicated region body
PF: predicated region fallthrough
CT: control target
= control target key end

     0   :  { %10 = vsyncpa [#allocation3], 0  ;;  %s538_s0 = inlined_call_operand.hbm [shape: f32[16,64], index: 0, kind: input, shape index: {}]   ;;  %s539_s1 = inlined_call_operand.hbm [shape: bf16[64,128], index: 1, kind: input, shape index: {}]   ;;  %s540_s2 = inlined_call_operand.vmem [shape: f32[1,128], index: 2, kind: input, shape index: {}]   ;;  %s541_s3 = inlined_call_operand.hbm [shape: bf16[128,128], index: 3, kind: input, shape index: {}]   ;;  %s542_s4 = inlined_call_operand.vmem [shape: f32[1,128], index: 4, kind: input, shape index: {}]   ;;  %s543_s5 = inlined_call_operand.hbm [shape: bf16[16,128], index: 5, kind: output, shape index: {}]  }
   0x1   :  { %11 = vsyncpa [#allocation6], 0 }
   0x2   :  { %12 = vsyncpa [#allocation4], 0  ;;  %s471_s18 = smov [#allocation5]  }
   0x3   :  { %s30_s19 = sshll.u32 %s471_s18, 4  ;;  %s31_s19 = int_to_ptr.vmem [resolvable:$true] %s30_s19 }
   0x4   :  { %s393_s20 = scalar_lea.vmem %s31_s19, 512  ;;  %p398_p1 = scmp.lt.s32.totalorder %s31_s19, %s31_s19 }
   0x5   :  { %p394_p0 = scmp.ne.s32.totalorder %s31_s19, %s393_s20  ;;  %p399_p2 = scmp.lt.s32.totalorder %s393_s20, %s393_s20 }
   0x7   :  { %p400_p3 = por %p399_p2, %p398_p1 }
   0x9   :  { %p401_p4 = pnand %p400_p3, %p394_p0 }
   0xb   :  { %404 = shalt.err (!%p401_p4)
}
   0xc   :  { %s472_s21 = smov 64   ;;  %s473_s22 = smov 4  }
   0xd   :  { %36 = dma.hbm_to_vmem [thread:$0]  %s539_s1, 512, %s31_s19, [#allocation6], %s472_s21, %s472_s21, %s473_s22  }
   0xe   :  { %s474_s25 = smov [#allocation2]  }
   0xf   :  { %s18_s26 = sshll.u32 %s474_s25, 4  ;;  %s19_s26 = int_to_ptr.vmem [resolvable:$true] %s18_s26 }
  0x10   :  { %s413_s27 = scalar_lea.vmem %s19_s26, 256  ;;  %p418_p6 = scmp.lt.s32.totalorder %s19_s26, %s19_s26 }
  0x11   :  { %p414_p5 = scmp.ne.s32.totalorder %s19_s26, %s413_s27  ;;  %p419_p7 = scmp.lt.s32.totalorder %s413_s27, %s413_s27 }
  0x13   :  { %p420_p8 = por %p419_p7, %p418_p6 }
  0x15   :  { %p421_p9 = pnand %p420_p8, %p414_p5 }
  0x17   :  { %424 = shalt.err (!%p421_p9)
}
  0x18   :  { %s475_s28 = smov 128   ;;  %s476_s29 = smov 8  }
  0x19   :  { %24 = dma.hbm_to_vmem [thread:$0]  %s538_s0, 256, %s19_s26, [#allocation3], %s475_s28, %s475_s28, %s476_s29  }
  0x1a   :  { %s477_s7 = smov [#allocation7]  }
  0x1b   :  { %s44_s8 = sshll.u32 %s477_s7, 4  ;;  %s45_s8 = int_to_ptr.vmem [resolvable:$true] %s44_s8 }
  0x1c   :  { %s433_s1 = scalar_lea.vmem %s45_s8, 1024  ;;  %p438_p11 = scmp.lt.s32.totalorder %s45_s8, %s45_s8 }
  0x1d   :  { %p434_p10 = scmp.ne.s32.totalorder %s45_s8, %s433_s1  ;;  %p439_p12 = scmp.lt.s32.totalorder %s433_s1, %s433_s1 }
  0x1f   :  { %p440_p13 = por %p439_p12, %p438_p11 }
  0x21   :  { %p441_p0 = pnand %p440_p13, %p434_p10 }
  0x23   :  { %444 = shalt.err (!%p441_p0)
}
  0x24   :  { %50 = dma.hbm_to_vmem [thread:$0]  %s541_s3, 1024, %s45_s8, [#allocation6], %s472_s21, %s472_s21, %s473_s22  }
  0x25   :  { %465 = dma.done.wait [#allocation3], 256  }
  0x26   :  { %466 = vsyncadd [#allocation3], 4294967040 }
  0x27   :  { %467 = dma.done.wait [#allocation6], 1536  }
  0x28   :  { %468 = vsyncadd [#allocation6], 4294965760  ;;  %v478_v0 = vmov 0.0   ;;  %vm479_vm0 = vmmov 0   ;;  %v373_v1 = vld [vmem:[#allocation5 + $0x18] sm:$0xff]   ;;  %v374_v2 = vld [vmem:[#allocation5 + $0x10] sm:$0xff]  }
  0x29   :  { %331 = vmatprep.subr.bf16.mxu0 %v478_v0  ;;  %339 = vmatprep.mubr.msk.bf16.mxu0 %vm479_vm0, %v478_v0  ;;  %v377_v3 = vld [vmem:[#allocation7 + $0x38] sm:$0xff]   ;;  %v375_v4 = vld [vmem:[#allocation5 + $0x8] sm:$0xff]   ;;  %v378_v5 = vld [vmem:[#allocation7 + $0x30] sm:$0xff]   ;;  %vm105_vm1 = vcmask 523264   ;;  %s480_s13 = smov [#allocation8]  }
  0x2a   :  { %343 = vmatprep.subr.bf16.mxu1 %v478_v0  ;;  %359 = vmatprep.mubr.msk.bf16.mxu1 %vm479_vm0, %v478_v0  ;;  %v376_v6 = vld [vmem:[#allocation5] sm:$0xff]   ;;  %v63_v7 = vld [vmem:[#allocation2] sm:$0xff]  ;;  %v64_v8 = vld [vmem:[#allocation2 + $0x8] sm:$0xff]  ;;  %s280_s14 = sshll.u32 %s480_s13, 4  ;;  %s281_s14 = int_to_ptr.vmem [resolvable:$true] %s280_s14 }
  0x2b   :  { %332 = vmatpush3.bf16.msra.mxu0 %v373_v1  ;;  %344 = vmatpush3.bf16.msra.mxu1 %v377_v3  ;;  %v379_v9 = vld [vmem:[#allocation7 + $0x28] sm:$0xff]   ;;  %v65_v10 = vpack.c.bf16 %v64_v8, %v63_v7  ;;  %v380_v11 = vld [vmem:[#allocation7 + $0x20] sm:$0xff]   ;;  %v381_v12 = vld [vmem:[#allocation7 + $0x18] sm:$0xff]   ;;  %p450_p2 = scmp.lt.s32.totalorder %s281_s14, %s281_s14 }
  0x2c   :  { %333 = vmatprep.subr.bf16.mxu0 %v478_v0  ;;  %345 = vmatprep.subr.bf16.mxu1 %v478_v0  ;;  %v382_v13 = vld [vmem:[#allocation7 + $0x10] sm:$0xff]   ;;  %v383_v14 = vld [vmem:[#allocation7 + $0x8] sm:$0xff]   ;;  %v384_v15 = vld [vmem:[#allocation7] sm:$0xff]  }
  0x2d   :  { %v293_v16 = vld [vmem:[%s540_s2] ss:$0 sm:$0xff]  ;;  %s445_s2 = scalar_lea.vmem %s281_s14, 128 }
  0x2e   :  { %v299_v27 = vld [vmem:[%s542_s4] ss:$0 sm:$0xff]  ;;  %p446_p1 = scmp.ne.s32.totalorder %s281_s14, %s445_s2  ;;  %p451_p3 = scmp.lt.s32.totalorder %s445_s2, %s445_s2 }
  0x2f   :  { %334 = vmatpush3.bf16.msra.mxu0 %v374_v2  ;;  %346 = vmatpush3.bf16.msra.mxu1 %v378_v5 }
  0x30   :  { %335 = vmatprep.subr.bf16.mxu0 %v478_v0  ;;  %347 = vmatprep.subr.bf16.mxu1 %v478_v0  ;;  %p452_p4 = por %p451_p3, %p450_p2 }
  0x32   :  { %p453_p5 = pnand %p452_p4, %p446_p1 }
  0x33   :  { %336 = vmatpush3.bf16.msra.mxu0 %v375_v4  ;;  %348 = vmatpush3.bf16.msra.mxu1 %v379_v9 }
  0x34   :  { %337 = vmatprep.subr.bf16.mxu0 %v478_v0  ;;  %349 = vmatprep.subr.bf16.mxu1 %v478_v0 }
  0x37   :  { %338 = vmatpush3.bf16.msra.mxu0 %v376_v6  ;;  %350 = vmatpush3.bf16.msra.mxu1 %v380_v11 }
  0x38   :  { %351 = vmatprep.subr.bf16.mxu1 %v478_v0 }
  0x3a   :  { %340 = vmatmul.mubr.msk.bf16.vlgmr.msra.gmra.mxu0 %vm105_vm1, %v65_v10 }
  0x3b   :  { %352 = vmatpush3.bf16.msra.mxu1 %v381_v12 }
  0x3c   :  { %353 = vmatprep.subr.bf16.mxu1 %v478_v0 }
  0x3f   :  { %354 = vmatpush3.bf16.msra.mxu1 %v382_v13 }
  0x40   :  { %355 = vmatprep.subr.bf16.mxu1 %v478_v0 }
  0x43   :  { %356 = vmatpush3.bf16.msra.mxu1 %v383_v14 }
  0x44   :  { %357 = vmatprep.subr.bf16.mxu1 %v478_v0 }
  0x47   :  { %358 = vmatpush3.bf16.msra.mxu1 %v384_v15 }
  0xfa   :  { %v143_v17 = vpop.f32.mrf.mxu0 }
  0xfb   :  { %v144_v19 = vadd.f32 %v293_v16, %v143_v17 }
  0xfc   :  { %v341_v18 = vpop.f32.mrf.mxu0 }
  0xfd   :  { %v150_v23 = vmax.f32 %v144_v19, 0.0 }
  0xfe   :  { %v146_v20 = vpop.f32.mrf.mxu0 }
  0xff   :  { %v147_v21 = vadd.f32 %v293_v16, %v146_v20 }
 0x100   :  { %v342_v22 = vpop.f32.mrf.mxu0 }
 0x101   :  { %v151_v24 = vmax.f32 %v147_v21, 0.0 }
 0x103   :  { %v152_v25 = vpack.c.bf16 %v151_v24, %v150_v23 }
 0x105   :  { %360 = vmatmul.mubr.bf16.vlgmr.msra.gmra.mxu1 %v152_v25 }
 0x1c5   :  { %v258_v26 = vpop.f32.mrf.mxu1 }
 0x1c6   :  { %v259_v30 = vadd.f32 %v299_v27, %v258_v26 }
 0x1c7   :  { %v361_v28 = vpop.f32.mrf.mxu1 }
 0x1c9   :  { %v261_v29 = vpop.f32.mrf.mxu1 }
 0x1ca   :  { %v262_v31 = vadd.f32 %v299_v27, %v261_v29 }
 0x1cb   :  { %v362_v32 = vpop.f32.mrf.mxu1 }
 0x1cc   :  { %v315_v33 = vpack.c.bf16 %v262_v31, %v259_v30 }
 0x1ce   :  { %316 = vst [vmem:[#allocation8] sm:$0xff] %v315_v33  }
 0x1cf   :  { %456 = shalt.err (!%p453_p5)
}
 0x1d0   :  { %286 = dma.vmem_to_hbm [thread:$0]  %s281_s14, 128, %s543_s5, [#allocation4], %s472_s21, %s472_s21, %s473_s22  }
 0x1d1   :  { %469 = dma.done.wait [#allocation4], 128  }
 0x1d2   :  { %470 = vsyncadd [#allocation4], 4294967168 }
 0x1d3   :  { %290 = vsyncpa [#allocation3], 1 }
 0x1d4   :  { %291 = vsyncpa [#allocation6], 1 }
 0x1d5   :  { %292 = vsyncpa [#allocation4], 1 }

</bundles_post_ra>
